<compile_context>
chip_gen: v5e
topology: v5e:2x2
jax: 0.10.0
libtpu: 0.0.40
codegen_flags: <defaults>
</compile_context>

<pallas_src>
import functools

import jax
import jax.numpy as jnp
from jax import lax
from jax.experimental import pallas as pl
from jax.experimental.pallas import tpu as pltpu

LN_EPS = 1e-5            # nn.LayerNorm default
NEG_FILL = -1e30         # finite causal-mask fill (no -inf -> no NaN risk)


def _vmem_limit_bytes():
    """Generation-aware VMEM cap: physical capacity minus ~24 MiB headroom."""
    try:
        cap = int(pltpu.get_tpu_info().vmem_capacity_bytes)
    except Exception:
        cap = 128 * 1024 * 1024
    return max(cap - 24 * 1024 * 1024, 32 * 1024 * 1024)


# ----------------------------- in-kernel helpers -----------------------------

def _layernorm(v, w, b):
    mu = jnp.mean(v, axis=-1, keepdims=True)
    var = jnp.mean((v - mu) ** 2, axis=-1, keepdims=True)
    return (v - mu) * lax.rsqrt(var + LN_EPS) * w + b


def _gelu_tanh(x):
    # TODO(synk): tanh-form GELU (runs on the EUP slot) differs from nn.GELU's
    #             exact erf by ~1e-3 relative; accepted numerics change per review.
    c = 0.7978845608028654  # sqrt(2/pi)
    return 0.5 * x * (1.0 + jnp.tanh(c * (x + 0.044715 * x * x * x)))


def _pick_tile(n, cap, align):
    """Largest divisor of n that is <= cap and align-aligned; else the full dim."""
    if n <= cap:
        return n
    for t in range(cap, align - 1, -1):
        if n % t == 0 and t % align == 0:
            return t
    return n


# ------------------------------- Pallas kernels -------------------------------

def stacked_blocks_kernel(x_ref, ln1w_ref, ln1b_ref, wqkv_ref, wo_ref, bo_ref,
                          ln2w_ref, ln2b_ref, w1_ref, b1_ref, w2_ref, b2_ref,
                          o_ref, oc_sc, *, num_heads):
    """grid = (batch, layer). o_ref (constant block index over the layer axis)
    is the VMEM-resident residual-stream carry; one grid step == one layer."""
    l = pl.program_id(1)

    @pl.when(l == 0)
    def _load_embeddings():
        o_ref[...] = x_ref[...]

    x = o_ref[...]                                    # (1, S, D) f32 residual stream
    _, S, D = x.shape
    dh = D // num_heads
    scale = dh ** -0.5

    # ------------------- causal self-attention (SABlock) -------------------
    h = _layernorm(x, ln1w_ref[0], ln1b_ref[0])
    qkv = jnp.einsum('bsd,de->bse', h.astype(jnp.bfloat16), wqkv_ref[0],
                     preferred_element_type=jnp.float32).astype(jnp.bfloat16)
    q = qkv[:, :, :D]
    k = qkv[:, :, D:2 * D]
    v = qkv[:, :, 2 * D:]

    row = lax.broadcasted_iota(jnp.int32, (S, S), 0)
    col = lax.broadcasted_iota(jnp.int32, (S, S), 1)
    causal = col <= row                               # (S, S) lower triangular

    for hh in range(num_heads):                       # static unrolled head loop
        sl = slice(hh * dh, (hh + 1) * dh)
        s_h = jnp.einsum('bqd,bkd->bqk', q[:, :, sl], k[:, :, sl],
                         preferred_element_type=jnp.float32) * scale
        s_h = jnp.where(causal, s_h, jnp.float32(NEG_FILL))
        m = jnp.max(s_h, axis=-1, keepdims=True)
        p = jnp.exp(s_h - m)
        p = p * pl.reciprocal(jnp.sum(p, axis=-1, keepdims=True), approx=True)
        o_h = jnp.einsum('bqk,bkd->bqd', p.astype(jnp.bfloat16), v[:, :, sl],
                         preferred_element_type=jnp.float32)      # (1, S, dh)
        oc_sc[:, :, sl] = o_h.astype(jnp.bfloat16)                # assemble heads

    # single K=D output projection (no per-head K=dh MXU underfill)
    attn = jnp.einsum('bsd,de->bse', oc_sc[...], wo_ref[0],
                      preferred_element_type=jnp.float32) + bo_ref[0]
    x = x + attn

    # ------------------------------ MLP block ------------------------------
    h2 = _layernorm(x, ln2w_ref[0], ln2b_ref[0])
    m1 = jnp.einsum('bsd,df->bsf', h2.astype(jnp.bfloat16), w1_ref[0],
                    preferred_element_type=jnp.float32) + b1_ref[0]
    m1 = _gelu_tanh(m1)
    m2 = jnp.einsum('bsf,fd->bsd', m1.astype(jnp.bfloat16), w2_ref[0],
                    preferred_element_type=jnp.float32) + b2_ref[0]

    o_ref[...] = x + m2                               # carry to next layer / final out


def logits_kernel(x_ref, w_ref, b_ref, o_ref):
    # x already bf16 (handed off from the block stack) -> no per-tile re-cast.
    o_ref[...] = jnp.einsum('bsd,dv->bsv', x_ref[...], w_ref[...],
                            preferred_element_type=jnp.float32) + b_ref[...]


# ------------------------------- host wrappers --------------------------------

def run_blocks(x, params, num_heads):
    B, S, D = x.shape
    L = params['wqkv'].shape[0]
    mlp_dim = params['w1'].shape[-1]

    def vec_spec(last):
        return pl.BlockSpec((1, 1, last), lambda b, l: (l, 0, 0))

    def mat_spec(r, c):
        # TODO(synk): on v5e consider pipeline_mode=pl.Buffered(3) for the big
        #             weight slabs if profiling shows exposed weight DMA.
        return pl.BlockSpec((1, r, c), lambda b, l: (l, 0, 0))

    act_spec = pl.BlockSpec((1, S, D), lambda b, l: (b, 0, 0))

    return pl.pallas_call(
        functools.partial(stacked_blocks_kernel, num_heads=num_heads),
        out_shape=jax.ShapeDtypeStruct((B, S, D), jnp.float32),
        grid_spec=pltpu.PrefetchScalarGridSpec(
            num_scalar_prefetch=0,
            grid=(B, L),                              # batch parallel, layers sequential
            in_specs=[act_spec,
                      vec_spec(D), vec_spec(D),       # ln1 w/b
                      mat_spec(D, 3 * D),             # fused [Wq|Wk|Wv]
                      mat_spec(D, D), vec_spec(D),    # out_proj w/b
                      vec_spec(D), vec_spec(D),       # ln2 w/b
                      mat_spec(D, mlp_dim), vec_spec(mlp_dim),
                      mat_spec(mlp_dim, D), vec_spec(D)],
            out_specs=act_spec,
            scratch_shapes=[pltpu.VMEM((1, S, D), jnp.bfloat16)]),  # head assembly
        compiler_params=pltpu.CompilerParams(
            dimension_semantics=("parallel", "arbitrary"),
            vmem_limit_bytes=_vmem_limit_bytes()),
    )(x,
      params['ln1_w'], params['ln1_b'],
      params['wqkv'],
      params['wo'], params['bo'],
      params['ln2_w'], params['ln2_b'],
      params['w1'], params['b1'],
      params['w2'], params['b2'])


def run_logits(x, w, b):
    B, S, D = x.shape
    V = w.shape[1]

    # Lane-pad the vocab axis so tiles stay multiples of 128 when V is tiled.
    Vp = V
    if V > 128 and V % 128 != 0:
        Vp = ((V + 127) // 128) * 128
        w = jnp.pad(w, ((0, 0), (0, Vp - V)))
        b = jnp.pad(b, ((0, 0), (0, Vp - V)))

    vmem = _vmem_limit_bytes()
    big = vmem >= 96 * 1024 * 1024                    # 128 MiB parts (v5e / v6e)
    salign = 16 if x.dtype == jnp.bfloat16 else 8
    ts = _pick_tile(S, 512 if big else 256, salign)   # seq tile (sublane-aligned)
    tv = _pick_tile(Vp, 2048 if big else 512, 128)    # vocab tile (lane-dense)
    grid = (S // ts, Vp // tv)

    out = pl.pallas_call(
        logits_kernel,
        out_shape=jax.ShapeDtypeStruct((B, S, Vp), jnp.float32),
        grid_spec=pltpu.PrefetchScalarGridSpec(
            num_scalar_prefetch=0,
            grid=grid,
            in_specs=[pl.BlockSpec((B, ts, D), lambda si, vi: (0, si, 0)),
                      pl.BlockSpec((D, tv), lambda si, vi: (0, vi)),
                      pl.BlockSpec((1, tv), lambda si, vi: (0, vi))],
            out_specs=pl.BlockSpec((B, ts, tv), lambda si, vi: (0, si, vi))),
        compiler_params=pltpu.CompilerParams(
            dimension_semantics=("parallel", "parallel"),
            vmem_limit_bytes=vmem),
    )(x, w, b)
    return out[:, :, :V] if Vp != V else out


def decoder_only_transformer(tokens, params, *, num_heads):
    # TODO(synk): token / positional embedding gathers stay in plain JAX
    #             (data-dependent gather); dropout rate 0.0 -> identity.
    B, S = tokens.shape
    tok_emb = jnp.take(params['tok_emb'], tokens, axis=0)          # (B, S, D)
    pos_emb = params['pos_emb'][:S][None, :, :]                    # (1, S, D)
    x = (tok_emb + pos_emb).astype(jnp.float32)
    x = run_blocks(x, params, num_heads)
    # bf16 hand-off: halves x DMA bytes for the (HBM-bound) logits matmul.
    return run_logits(x.astype(jnp.bfloat16), params['logits_w'], params['logits_b'])


# ------------------------------ parameter init --------------------------------

def init_params(key, *, num_tokens, max_seq_len, dim, depth, mlp_dim):
    ks = iter(jax.random.split(key, 7))

    def nrm(k, shape, scale=0.02, dtype=jnp.float32):
        return (scale * jax.random.normal(k, shape)).astype(dtype)

    return {
        # embeddings & logits head (embeddings kept f32; matmul weights bf16)
        'tok_emb': nrm(next(ks), (num_tokens, dim), 1.0),          # nn.Embedding ~ N(0,1)
        'pos_emb': nrm(next(ks), (max_seq_len, dim), 1.0),
        'logits_w': nrm(next(ks), (dim, num_tokens), dtype=jnp.bfloat16),
        'logits_b': jnp.zeros((1, num_tokens), jnp.float32),
        # per-layer stacked weights (leading layer axis)
        'ln1_w': jnp.ones((depth, 1, dim), jnp.float32),
        'ln1_b': jnp.zeros((depth, 1, dim), jnp.float32),
        'wqkv': nrm(next(ks), (depth, dim, 3 * dim), dtype=jnp.bfloat16),  # [Wq|Wk|Wv]
        'wo': nrm(next(ks), (depth, dim, dim), dtype=jnp.bfloat16),
        'bo': jnp.zeros((depth, 1, dim), jnp.float32),
        'ln2_w': jnp.ones((depth, 1, dim), jnp.float32),
        'ln2_b': jnp.zeros((depth, 1, dim), jnp.float32),
        'w1': nrm(next(ks), (depth, dim, mlp_dim), dtype=jnp.bfloat16),
        'b1': jnp.zeros((depth, 1, mlp_dim), jnp.float32),
        'w2': nrm(next(ks), (depth, mlp_dim, dim), dtype=jnp.bfloat16),
        'b2': jnp.zeros((depth, 1, dim), jnp.float32),
    }


# ------------------------------------ main -------------------------------------

if __name__ == "__main__":
    num_tokens, max_seq_len = 64, 16
    attn_layers_dim, attn_layers_depth, attn_layers_heads = 32, 2, 4
    B, S = 2, 8

    key = jax.random.PRNGKey(0)
    kp, kt = jax.random.split(key)
    params = init_params(kp, num_tokens=num_tokens, max_seq_len=max_seq_len,
                         dim=attn_layers_dim, depth=attn_layers_depth,
                         mlp_dim=4 * attn_layers_dim)
    tokens = jax.random.randint(kt, (B, S), 0, num_tokens, dtype=jnp.int32)

    logits = decoder_only_transformer(tokens, params, num_heads=attn_layers_heads)
    logits = jax.block_until_ready(logits)

    assert logits.shape == (B, S, num_tokens), logits.shape
    assert bool(jnp.all(jnp.isfinite(logits)))
    print("KERNEL_OK")
</pallas_src>

<mosaic_0001>
module attributes {stable_mosaic.version = 11 : i64} {
  func.func @stacked_blocks_kernel(%arg0: i32, %arg1: i32, %arg2: memref<1x8x32xf32, #tpu.memory_space<vmem>>, %arg3: memref<1x1x32xf32, #tpu.memory_space<vmem>>, %arg4: memref<1x1x32xf32, #tpu.memory_space<vmem>>, %arg5: memref<1x32x96xbf16, #tpu.memory_space<vmem>>, %arg6: memref<1x32x32xbf16, #tpu.memory_space<vmem>>, %arg7: memref<1x1x32xf32, #tpu.memory_space<vmem>>, %arg8: memref<1x1x32xf32, #tpu.memory_space<vmem>>, %arg9: memref<1x1x32xf32, #tpu.memory_space<vmem>>, %arg10: memref<1x32x128xbf16, #tpu.memory_space<vmem>>, %arg11: memref<1x1x128xf32, #tpu.memory_space<vmem>>, %arg12: memref<1x128x32xbf16, #tpu.memory_space<vmem>>, %arg13: memref<1x1x32xf32, #tpu.memory_space<vmem>>, %arg14: memref<1x8x32xf32, #tpu.memory_space<vmem>>, %arg15: memref<1x8x32xbf16, #tpu.memory_space<vmem>>) attributes {dimension_semantics = [#tpu.dimension_semantics<parallel>, #tpu.dimension_semantics<arbitrary>], iteration_bounds = array<i64: 2, 2>, scalar_prefetch = 0 : i64, scratch_operands = 1 : i64, tpu.core_type = #tpu.core_type<tc>, window_params = [{transform_indices = @transform_0, window_bounds = array<i64: 1, 8, 32>}, {transform_indices = @transform_1, window_bounds = array<i64: 1, 1, 32>}, {transform_indices = @transform_2, window_bounds = array<i64: 1, 1, 32>}, {transform_indices = @transform_3, window_bounds = array<i64: 1, 32, 96>}, {transform_indices = @transform_4, window_bounds = array<i64: 1, 32, 32>}, {transform_indices = @transform_5, window_bounds = array<i64: 1, 1, 32>}, {transform_indices = @transform_6, window_bounds = array<i64: 1, 1, 32>}, {transform_indices = @transform_7, window_bounds = array<i64: 1, 1, 32>}, {transform_indices = @transform_8, window_bounds = array<i64: 1, 32, 128>}, {transform_indices = @transform_9, window_bounds = array<i64: 1, 1, 128>}, {transform_indices = @transform_10, window_bounds = array<i64: 1, 128, 32>}, {transform_indices = @transform_11, window_bounds = array<i64: 1, 1, 32>}, {transform_indices = @transform_12, window_bounds = array<i64: 1, 8, 32>}]} {
    %c0_i32 = arith.constant 0 : i32
    %0 = arith.cmpi eq, %arg1, %c0_i32 : i32
    %1 = arith.extui %0 : i1 to i32
    %c0_i32_0 = arith.constant 0 : i32
    %2 = arith.cmpi ne, %1, %c0_i32_0 : i32
    scf.if %2 {
      %c0_92 = arith.constant 0 : index
      %c0_93 = arith.constant 0 : index
      %c0_94 = arith.constant 0 : index
      %206 = vector.load %arg2[%c0_92, %c0_93, %c0_94] : memref<1x8x32xf32, #tpu.memory_space<vmem>>, vector<1x8x32xf32>
      %c0_95 = arith.constant 0 : index
      %c0_96 = arith.constant 0 : index
      %c0_97 = arith.constant 0 : index
      %207 = vector.load %arg14[%c0_95, %c0_96, %c0_97] : memref<1x8x32xf32, #tpu.memory_space<vmem>>, vector<1x8x32xf32>
      tpu.vector_store %arg14[%c0_95, %c0_96, %c0_97], %206 {strides = array<i32>} : memref<1x8x32xf32, #tpu.memory_space<vmem>>, vector<1x8x32xf32>,
    } else {
    }
    %c0 = arith.constant 0 : index
    %c0_1 = arith.constant 0 : index
    %c0_2 = arith.constant 0 : index
    %3 = vector.load %arg14[%c0, %c0_1, %c0_2] : memref<1x8x32xf32, #tpu.memory_space<vmem>>, vector<1x8x32xf32>
    %c0_3 = arith.constant 0 : index
    %c0_4 = arith.constant 0 : index
    %c0_5 = arith.constant 0 : index
    %4 = vector.load %arg3[%c0_3, %c0_4, %c0_5] : memref<1x1x32xf32, #tpu.memory_space<vmem>>, vector<1x1x32xf32>
    %5 = vector.shape_cast %4 : vector<1x1x32xf32> to vector<1x32xf32>
    %c0_6 = arith.constant 0 : index
    %c0_7 = arith.constant 0 : index
    %c0_8 = arith.constant 0 : index
    %6 = vector.load %arg4[%c0_6, %c0_7, %c0_8] : memref<1x1x32xf32, #tpu.memory_space<vmem>>, vector<1x1x32xf32>
    %7 = vector.shape_cast %6 : vector<1x1x32xf32> to vector<1x32xf32>
    %cst = arith.constant dense<0.000000e+00> : vector<1x8xf32>
    %8 = vector.multi_reduction <add>, %3, %cst [2] : vector<1x8x32xf32> to vector<1x8xf32>
    %9 = vector.shape_cast %8 : vector<1x8xf32> to vector<1x8x1xf32>
    %cst_9 = arith.constant 3.200000e+01 : f32
    %10 = vector.broadcast %cst_9 : f32 to vector<1x8x1xf32>
    %11 = arith.divf %9, %10 : vector<1x8x1xf32>
    %12 = vector.broadcast %11 : vector<1x8x1xf32> to vector<1x8x32xf32>
    %13 = arith.subf %3, %12 : vector<1x8x32xf32>
    %14 = arith.mulf %13, %13 : vector<1x8x32xf32>
    %cst_10 = arith.constant dense<0.000000e+00> : vector<1x8xf32>
    %15 = vector.multi_reduction <add>, %14, %cst_10 [2] : vector<1x8x32xf32> to vector<1x8xf32>
    %16 = vector.shape_cast %15 : vector<1x8xf32> to vector<1x8x1xf32>
    %cst_11 = arith.constant 3.200000e+01 : f32
    %17 = vector.broadcast %cst_11 : f32 to vector<1x8x1xf32>
    %18 = arith.divf %16, %17 : vector<1x8x1xf32>
    %19 = vector.broadcast %11 : vector<1x8x1xf32> to vector<1x8x32xf32>
    %20 = arith.subf %3, %19 : vector<1x8x32xf32>
    %cst_12 = arith.constant 9.99999974E-6 : f32
    %21 = vector.broadcast %cst_12 : f32 to vector<1x8x1xf32>
    %22 = arith.addf %18, %21 : vector<1x8x1xf32>
    %23 = math.rsqrt %22 : vector<1x8x1xf32>
    %24 = vector.broadcast %23 : vector<1x8x1xf32> to vector<1x8x32xf32>
    %25 = arith.mulf %20, %24 : vector<1x8x32xf32>
    %26 = vector.shape_cast %5 : vector<1x32xf32> to vector<1x1x32xf32>
    %27 = vector.broadcast %26 : vector<1x1x32xf32> to vector<1x8x32xf32>
    %28 = arith.mulf %25, %27 : vector<1x8x32xf32>
    %29 = vector.shape_cast %7 : vector<1x32xf32> to vector<1x1x32xf32>
    %30 = vector.broadcast %29 : vector<1x1x32xf32> to vector<1x8x32xf32>
    %31 = arith.addf %28, %30 : vector<1x8x32xf32>
    %32 = arith.truncf %31 : vector<1x8x32xf32> to vector<1x8x32xbf16>
    %c0_13 = arith.constant 0 : index
    %c0_14 = arith.constant 0 : index
    %c0_15 = arith.constant 0 : index
    %33 = vector.load %arg5[%c0_13, %c0_14, %c0_15] : memref<1x32x96xbf16, #tpu.memory_space<vmem>>, vector<1x32x96xbf16>
    %34 = vector.shape_cast %33 : vector<1x32x96xbf16> to vector<32x96xbf16>
    "tpu.trace_start"() <{level = 10 : i32, message = "bsd,de->bse"}> : () -> ()
    %cst_16 = arith.constant dense<0.000000e+00> : vector<1x8x96xf32>
    %35 = tpu.matmul %32, %34, %cst_16 {dimension_numbers = #tpu.dot_dimension_numbers<[2], [0], [0, 1], [1], [0, 0, 0, 1, 1, 1], [], []>} : vector<1x8x32xbf16>, vector<32x96xbf16>, vector<1x8x96xf32> -> vector<1x8x96xf32>
    "tpu.trace_stop"() : () -> ()
    %36 = arith.truncf %35 : vector<1x8x96xf32> to vector<1x8x96xbf16>
    %37 = vector.extract_strided_slice %36 {offsets = [0, 0, 0], sizes = [1, 8, 32], strides = [1, 1, 1]} : vector<1x8x96xbf16> to vector<1x8x32xbf16>
    %38 = vector.extract_strided_slice %36 {offsets = [0, 0, 32], sizes = [1, 8, 32], strides = [1, 1, 1]} : vector<1x8x96xbf16> to vector<1x8x32xbf16>
    %39 = vector.extract_strided_slice %36 {offsets = [0, 0, 64], sizes = [1, 8, 32], strides = [1, 1, 1]} : vector<1x8x96xbf16> to vector<1x8x32xbf16>
    %40 = tpu.iota {dimensions = array<i32: 0>} : vector<8x8xi32>
    %41 = tpu.iota {dimensions = array<i32: 1>} : vector<8x8xi32>
    %42 = arith.cmpi sle, %41, %40 : vector<8x8xi32>
    %43 = vector.extract_strided_slice %37 {offsets = [0, 0, 0], sizes = [1, 8, 8], strides = [1, 1, 1]} : vector<1x8x32xbf16> to vector<1x8x8xbf16>
    %44 = vector.extract_strided_slice %38 {offsets = [0, 0, 0], sizes = [1, 8, 8], strides = [1, 1, 1]} : vector<1x8x32xbf16> to vector<1x8x8xbf16>
    "tpu.trace_start"() <{level = 10 : i32, message = "bqd,bkd->bqk"}> : () -> ()
    %cst_17 = arith.constant dense<0.000000e+00> : vector<1x8x8xf32>
    %45 = tpu.matmul %43, %44, %cst_17 {dimension_numbers = #tpu.dot_dimension_numbers<[2], [2], [1], [1], [0, 0, 0, 1, 1, 1], [0], [0]>} : vector<1x8x8xbf16>, vector<1x8x8xbf16>, vector<1x8x8xf32> -> vector<1x8x8xf32>
    "tpu.trace_stop"() : () -> ()
    %cst_18 = arith.constant 0.353553385 : f32
    %46 = vector.broadcast %cst_18 : f32 to vector<1x8x8xf32>
    %47 = arith.mulf %45, %46 : vector<1x8x8xf32>
    %cst_19 = arith.constant -1.000000e+30 : f32
    %48 = vector.shape_cast %42 : vector<8x8xi1> to vector<1x8x8xi1>
    %49 = vector.broadcast %cst_19 : f32 to vector<1x8x8xf32>
    %50 = arith.select %48, %47, %49 : vector<1x8x8xi1>, vector<1x8x8xf32>
    %cst_20 = arith.constant dense<0xFF800000> : vector<1x8xf32>
    %51 = vector.multi_reduction <maximumf>, %50, %cst_20 [2] : vector<1x8x8xf32> to vector<1x8xf32>
    %52 = vector.shape_cast %51 : vector<1x8xf32> to vector<1x8x1xf32>
    %53 = vector.broadcast %52 : vector<1x8x1xf32> to vector<1x8x8xf32>
    %54 = arith.subf %50, %53 : vector<1x8x8xf32>
    %55 = math.exp %54 : vector<1x8x8xf32>
    %cst_21 = arith.constant dense<0.000000e+00> : vector<1x8xf32>
    %56 = vector.multi_reduction <add>, %55, %cst_21 [2] : vector<1x8x8xf32> to vector<1x8xf32>
    %57 = vector.shape_cast %56 : vector<1x8xf32> to vector<1x8x1xf32>
    %58 = tpu.reciprocal %57 {approx = true} : vector<1x8x1xf32> -> vector<1x8x1xf32>
    %59 = vector.broadcast %58 : vector<1x8x1xf32> to vector<1x8x8xf32>
    %60 = arith.mulf %55, %59 : vector<1x8x8xf32>
    %61 = arith.truncf %60 : vector<1x8x8xf32> to vector<1x8x8xbf16>
    %62 = vector.extract_strided_slice %39 {offsets = [0, 0, 0], sizes = [1, 8, 8], strides = [1, 1, 1]} : vector<1x8x32xbf16> to vector<1x8x8xbf16>
    "tpu.trace_start"() <{level = 10 : i32, message = "bqk,bkd->bqd"}> : () -> ()
    %cst_22 = arith.constant dense<0.000000e+00> : vector<1x8x8xf32>
    %63 = tpu.matmul %61, %62, %cst_22 {dimension_numbers = #tpu.dot_dimension_numbers<[2], [1], [1], [2], [0, 0, 0, 1, 1, 2], [0], [0]>} : vector<1x8x8xbf16>, vector<1x8x8xbf16>, vector<1x8x8xf32> -> vector<1x8x8xf32>
    "tpu.trace_stop"() : () -> ()
    %64 = arith.truncf %63 : vector<1x8x8xf32> to vector<1x8x8xbf16>
    %c0_23 = arith.constant 0 : index
    %c0_24 = arith.constant 0 : index
    %c0_25 = arith.constant 0 : index
    %65 = vector.load %arg15[%c0_23, %c0_24, %c0_25] : memref<1x8x32xbf16, #tpu.memory_space<vmem>>, vector<1x8x8xbf16>
    tpu.vector_store %arg15[%c0_23, %c0_24, %c0_25], %64 {strides = array<i32>} : memref<1x8x32xbf16, #tpu.memory_space<vmem>>, vector<1x8x8xbf16>,
    %66 = vector.extract_strided_slice %37 {offsets = [0, 0, 8], sizes = [1, 8, 8], strides = [1, 1, 1]} : vector<1x8x32xbf16> to vector<1x8x8xbf16>
    %67 = vector.extract_strided_slice %38 {offsets = [0, 0, 8], sizes = [1, 8, 8], strides = [1, 1, 1]} : vector<1x8x32xbf16> to vector<1x8x8xbf16>
    "tpu.trace_start"() <{level = 10 : i32, message = "bqd,bkd->bqk"}> : () -> ()
    %cst_26 = arith.constant dense<0.000000e+00> : vector<1x8x8xf32>
    %68 = tpu.matmul %66, %67, %cst_26 {dimension_numbers = #tpu.dot_dimension_numbers<[2], [2], [1], [1], [0, 0, 0, 1, 1, 1], [0], [0]>} : vector<1x8x8xbf16>, vector<1x8x8xbf16>, vector<1x8x8xf32> -> vector<1x8x8xf32>
    "tpu.trace_stop"() : () -> ()
    %cst_27 = arith.constant 0.353553385 : f32
    %69 = vector.broadcast %cst_27 : f32 to vector<1x8x8xf32>
    %70 = arith.mulf %68, %69 : vector<1x8x8xf32>
    %cst_28 = arith.constant -1.000000e+30 : f32
    %71 = vector.shape_cast %42 : vector<8x8xi1> to vector<1x8x8xi1>
    %72 = vector.broadcast %cst_28 : f32 to vector<1x8x8xf32>
    %73 = arith.select %71, %70, %72 : vector<1x8x8xi1>, vector<1x8x8xf32>
    %cst_29 = arith.constant dense<0xFF800000> : vector<1x8xf32>
    %74 = vector.multi_reduction <maximumf>, %73, %cst_29 [2] : vector<1x8x8xf32> to vector<1x8xf32>
    %75 = vector.shape_cast %74 : vector<1x8xf32> to vector<1x8x1xf32>
    %76 = vector.broadcast %75 : vector<1x8x1xf32> to vector<1x8x8xf32>
    %77 = arith.subf %73, %76 : vector<1x8x8xf32>
    %78 = math.exp %77 : vector<1x8x8xf32>
    %cst_30 = arith.constant dense<0.000000e+00> : vector<1x8xf32>
    %79 = vector.multi_reduction <add>, %78, %cst_30 [2] : vector<1x8x8xf32> to vector<1x8xf32>
    %80 = vector.shape_cast %79 : vector<1x8xf32> to vector<1x8x1xf32>
    %81 = tpu.reciprocal %80 {approx = true} : vector<1x8x1xf32> -> vector<1x8x1xf32>
    %82 = vector.broadcast %81 : vector<1x8x1xf32> to vector<1x8x8xf32>
    %83 = arith.mulf %78, %82 : vector<1x8x8xf32>
    %84 = arith.truncf %83 : vector<1x8x8xf32> to vector<1x8x8xbf16>
    %85 = vector.extract_strided_slice %39 {offsets = [0, 0, 8], sizes = [1, 8, 8], strides = [1, 1, 1]} : vector<1x8x32xbf16> to vector<1x8x8xbf16>
    "tpu.trace_start"() <{level = 10 : i32, message = "bqk,bkd->bqd"}> : () -> ()
    %cst_31 = arith.constant dense<0.000000e+00> : vector<1x8x8xf32>
    %86 = tpu.matmul %84, %85, %cst_31 {dimension_numbers = #tpu.dot_dimension_numbers<[2], [1], [1], [2], [0, 0, 0, 1, 1, 2], [0], [0]>} : vector<1x8x8xbf16>, vector<1x8x8xbf16>, vector<1x8x8xf32> -> vector<1x8x8xf32>
    "tpu.trace_stop"() : () -> ()
    %87 = arith.truncf %86 : vector<1x8x8xf32> to vector<1x8x8xbf16>
    %c0_32 = arith.constant 0 : index
    %c0_33 = arith.constant 0 : index
    %c8 = arith.constant 8 : index
    %88 = vector.load %arg15[%c0_32, %c0_33, %c8] : memref<1x8x32xbf16, #tpu.memory_space<vmem>>, vector<1x8x8xbf16>
    tpu.vector_store %arg15[%c0_32, %c0_33, %c8], %87 {strides = array<i32>} : memref<1x8x32xbf16, #tpu.memory_space<vmem>>, vector<1x8x8xbf16>,
    %89 = vector.extract_strided_slice %37 {offsets = [0, 0, 16], sizes = [1, 8, 8], strides = [1, 1, 1]} : vector<1x8x32xbf16> to vector<1x8x8xbf16>
    %90 = vector.extract_strided_slice %38 {offsets = [0, 0, 16], sizes = [1, 8, 8], strides = [1, 1, 1]} : vector<1x8x32xbf16> to vector<1x8x8xbf16>
    "tpu.trace_start"() <{level = 10 : i32, message = "bqd,bkd->bqk"}> : () -> ()
    %cst_34 = arith.constant dense<0.000000e+00> : vector<1x8x8xf32>
    %91 = tpu.matmul %89, %90, %cst_34 {dimension_numbers = #tpu.dot_dimension_numbers<[2], [2], [1], [1], [0, 0, 0, 1, 1, 1], [0], [0]>} : vector<1x8x8xbf16>, vector<1x8x8xbf16>, vector<1x8x8xf32> -> vector<1x8x8xf32>
    "tpu.trace_stop"() : () -> ()
    %cst_35 = arith.constant 0.353553385 : f32
    %92 = vector.broadcast %cst_35 : f32 to vector<1x8x8xf32>
    %93 = arith.mulf %91, %92 : vector<1x8x8xf32>
    %cst_36 = arith.constant -1.000000e+30 : f32
    %94 = vector.shape_cast %42 : vector<8x8xi1> to vector<1x8x8xi1>
    %95 = vector.broadcast %cst_36 : f32 to vector<1x8x8xf32>
    %96 = arith.select %94, %93, %95 : vector<1x8x8xi1>, vector<1x8x8xf32>
    %cst_37 = arith.constant dense<0xFF800000> : vector<1x8xf32>
    %97 = vector.multi_reduction <maximumf>, %96, %cst_37 [2] : vector<1x8x8xf32> to vector<1x8xf32>
    %98 = vector.shape_cast %97 : vector<1x8xf32> to vector<1x8x1xf32>
    %99 = vector.broadcast %98 : vector<1x8x1xf32> to vector<1x8x8xf32>
    %100 = arith.subf %96, %99 : vector<1x8x8xf32>
    %101 = math.exp %100 : vector<1x8x8xf32>
    %cst_38 = arith.constant dense<0.000000e+00> : vector<1x8xf32>
    %102 = vector.multi_reduction <add>, %101, %cst_38 [2] : vector<1x8x8xf32> to vector<1x8xf32>
    %103 = vector.shape_cast %102 : vector<1x8xf32> to vector<1x8x1xf32>
    %104 = tpu.reciprocal %103 {approx = true} : vector<1x8x1xf32> -> vector<1x8x1xf32>
    %105 = vector.broadcast %104 : vector<1x8x1xf32> to vector<1x8x8xf32>
    %106 = arith.mulf %101, %105 : vector<1x8x8xf32>
    %107 = arith.truncf %106 : vector<1x8x8xf32> to vector<1x8x8xbf16>
    %108 = vector.extract_strided_slice %39 {offsets = [0, 0, 16], sizes = [1, 8, 8], strides = [1, 1, 1]} : vector<1x8x32xbf16> to vector<1x8x8xbf16>
    "tpu.trace_start"() <{level = 10 : i32, message = "bqk,bkd->bqd"}> : () -> ()
    %cst_39 = arith.constant dense<0.000000e+00> : vector<1x8x8xf32>
    %109 = tpu.matmul %107, %108, %cst_39 {dimension_numbers = #tpu.dot_dimension_numbers<[2], [1], [1], [2], [0, 0, 0, 1, 1, 2], [0], [0]>} : vector<1x8x8xbf16>, vector<1x8x8xbf16>, vector<1x8x8xf32> -> vector<1x8x8xf32>
    "tpu.trace_stop"() : () -> ()
    %110 = arith.truncf %109 : vector<1x8x8xf32> to vector<1x8x8xbf16>
    %c0_40 = arith.constant 0 : index
    %c0_41 = arith.constant 0 : index
    %c16 = arith.constant 16 : index
    %111 = vector.load %arg15[%c0_40, %c0_41, %c16] : memref<1x8x32xbf16, #tpu.memory_space<vmem>>, vector<1x8x8xbf16>
    tpu.vector_store %arg15[%c0_40, %c0_41, %c16], %110 {strides = array<i32>} : memref<1x8x32xbf16, #tpu.memory_space<vmem>>, vector<1x8x8xbf16>,
    %112 = vector.extract_strided_slice %37 {offsets = [0, 0, 24], sizes = [1, 8, 8], strides = [1, 1, 1]} : vector<1x8x32xbf16> to vector<1x8x8xbf16>
    %113 = vector.extract_strided_slice %38 {offsets = [0, 0, 24], sizes = [1, 8, 8], strides = [1, 1, 1]} : vector<1x8x32xbf16> to vector<1x8x8xbf16>
    "tpu.trace_start"() <{level = 10 : i32, message = "bqd,bkd->bqk"}> : () -> ()
    %cst_42 = arith.constant dense<0.000000e+00> : vector<1x8x8xf32>
    %114 = tpu.matmul %112, %113, %cst_42 {dimension_numbers = #tpu.dot_dimension_numbers<[2], [2], [1], [1], [0, 0, 0, 1, 1, 1], [0], [0]>} : vector<1x8x8xbf16>, vector<1x8x8xbf16>, vector<1x8x8xf32> -> vector<1x8x8xf32>
    "tpu.trace_stop"() : () -> ()
    %cst_43 = arith.constant 0.353553385 : f32
    %115 = vector.broadcast %cst_43 : f32 to vector<1x8x8xf32>
    %116 = arith.mulf %114, %115 : vector<1x8x8xf32>
    %cst_44 = arith.constant -1.000000e+30 : f32
    %117 = vector.shape_cast %42 : vector<8x8xi1> to vector<1x8x8xi1>
    %118 = vector.broadcast %cst_44 : f32 to vector<1x8x8xf32>
    %119 = arith.select %117, %116, %118 : vector<1x8x8xi1>, vector<1x8x8xf32>
    %cst_45 = arith.constant dense<0xFF800000> : vector<1x8xf32>
    %120 = vector.multi_reduction <maximumf>, %119, %cst_45 [2] : vector<1x8x8xf32> to vector<1x8xf32>
    %121 = vector.shape_cast %120 : vector<1x8xf32> to vector<1x8x1xf32>
    %122 = vector.broadcast %121 : vector<1x8x1xf32> to vector<1x8x8xf32>
    %123 = arith.subf %119, %122 : vector<1x8x8xf32>
    %124 = math.exp %123 : vector<1x8x8xf32>
    %cst_46 = arith.constant dense<0.000000e+00> : vector<1x8xf32>
    %125 = vector.multi_reduction <add>, %124, %cst_46 [2] : vector<1x8x8xf32> to vector<1x8xf32>
    %126 = vector.shape_cast %125 : vector<1x8xf32> to vector<1x8x1xf32>
    %127 = tpu.reciprocal %126 {approx = true} : vector<1x8x1xf32> -> vector<1x8x1xf32>
    %128 = vector.broadcast %127 : vector<1x8x1xf32> to vector<1x8x8xf32>
    %129 = arith.mulf %124, %128 : vector<1x8x8xf32>
    %130 = arith.truncf %129 : vector<1x8x8xf32> to vector<1x8x8xbf16>
    %131 = vector.extract_strided_slice %39 {offsets = [0, 0, 24], sizes = [1, 8, 8], strides = [1, 1, 1]} : vector<1x8x32xbf16> to vector<1x8x8xbf16>
    "tpu.trace_start"() <{level = 10 : i32, message = "bqk,bkd->bqd"}> : () -> ()
    %cst_47 = arith.constant dense<0.000000e+00> : vector<1x8x8xf32>
    %132 = tpu.matmul %130, %131, %cst_47 {dimension_numbers = #tpu.dot_dimension_numbers<[2], [1], [1], [2], [0, 0, 0, 1, 1, 2], [0], [0]>} : vector<1x8x8xbf16>, vector<1x8x8xbf16>, vector<1x8x8xf32> -> vector<1x8x8xf32>
    "tpu.trace_stop"() : () -> ()
    %133 = arith.truncf %132 : vector<1x8x8xf32> to vector<1x8x8xbf16>
    %c0_48 = arith.constant 0 : index
    %c0_49 = arith.constant 0 : index
    %c24 = arith.constant 24 : index
    %134 = vector.load %arg15[%c0_48, %c0_49, %c24] : memref<1x8x32xbf16, #tpu.memory_space<vmem>>, vector<1x8x8xbf16>
    tpu.vector_store %arg15[%c0_48, %c0_49, %c24], %133 {strides = array<i32>} : memref<1x8x32xbf16, #tpu.memory_space<vmem>>, vector<1x8x8xbf16>,
    %c0_50 = arith.constant 0 : index
    %c0_51 = arith.constant 0 : index
    %c0_52 = arith.constant 0 : index
    %135 = vector.load %arg15[%c0_50, %c0_51, %c0_52] : memref<1x8x32xbf16, #tpu.memory_space<vmem>>, vector<1x8x32xbf16>
    %c0_53 = arith.constant 0 : index
    %c0_54 = arith.constant 0 : index
    %c0_55 = arith.constant 0 : index
    %136 = vector.load %arg6[%c0_53, %c0_54, %c0_55] : memref<1x32x32xbf16, #tpu.memory_space<vmem>>, vector<1x32x32xbf16>
    %137 = vector.shape_cast %136 : vector<1x32x32xbf16> to vector<32x32xbf16>
    "tpu.trace_start"() <{level = 10 : i32, message = "bsd,de->bse"}> : () -> ()
    %cst_56 = arith.constant dense<0.000000e+00> : vector<1x8x32xf32>
    %138 = tpu.matmul %135, %137, %cst_56 {dimension_numbers = #tpu.dot_dimension_numbers<[2], [0], [0, 1], [1], [0, 0, 0, 1, 1, 1], [], []>} : vector<1x8x32xbf16>, vector<32x32xbf16>, vector<1x8x32xf32> -> vector<1x8x32xf32>
    "tpu.trace_stop"() : () -> ()
    %c0_57 = arith.constant 0 : index
    %c0_58 = arith.constant 0 : index
    %c0_59 = arith.constant 0 : index
    %139 = vector.load %arg7[%c0_57, %c0_58, %c0_59] : memref<1x1x32xf32, #tpu.memory_space<vmem>>, vector<1x1x32xf32>
    %140 = vector.shape_cast %139 : vector<1x1x32xf32> to vector<1x32xf32>
    %141 = vector.shape_cast %140 : vector<1x32xf32> to vector<1x1x32xf32>
    %142 = vector.broadcast %141 : vector<1x1x32xf32> to vector<1x8x32xf32>
    %143 = arith.addf %138, %142 : vector<1x8x32xf32>
    %144 = arith.addf %3, %143 : vector<1x8x32xf32>
    %c0_60 = arith.constant 0 : index
    %c0_61 = arith.constant 0 : index
    %c0_62 = arith.constant 0 : index
    %145 = vector.load %arg8[%c0_60, %c0_61, %c0_62] : memref<1x1x32xf32, #tpu.memory_space<vmem>>, vector<1x1x32xf32>
    %146 = vector.shape_cast %145 : vector<1x1x32xf32> to vector<1x32xf32>
    %c0_63 = arith.constant 0 : index
    %c0_64 = arith.constant 0 : index
    %c0_65 = arith.constant 0 : index
    %147 = vector.load %arg9[%c0_63, %c0_64, %c0_65] : memref<1x1x32xf32, #tpu.memory_space<vmem>>, vector<1x1x32xf32>
    %148 = vector.shape_cast %147 : vector<1x1x32xf32> to vector<1x32xf32>
    %cst_66 = arith.constant dense<0.000000e+00> : vector<1x8xf32>
    %149 = vector.multi_reduction <add>, %144, %cst_66 [2] : vector<1x8x32xf32> to vector<1x8xf32>
    %150 = vector.shape_cast %149 : vector<1x8xf32> to vector<1x8x1xf32>
    %cst_67 = arith.constant 3.200000e+01 : f32
    %151 = vector.broadcast %cst_67 : f32 to vector<1x8x1xf32>
    %152 = arith.divf %150, %151 : vector<1x8x1xf32>
    %153 = vector.broadcast %152 : vector<1x8x1xf32> to vector<1x8x32xf32>
    %154 = arith.subf %144, %153 : vector<1x8x32xf32>
    %155 = arith.mulf %154, %154 : vector<1x8x32xf32>
    %cst_68 = arith.constant dense<0.000000e+00> : vector<1x8xf32>
    %156 = vector.multi_reduction <add>, %155, %cst_68 [2] : vector<1x8x32xf32> to vector<1x8xf32>
    %157 = vector.shape_cast %156 : vector<1x8xf32> to vector<1x8x1xf32>
    %cst_69 = arith.constant 3.200000e+01 : f32
    %158 = vector.broadcast %cst_69 : f32 to vector<1x8x1xf32>
    %159 = arith.divf %157, %158 : vector<1x8x1xf32>
    %160 = vector.broadcast %152 : vector<1x8x1xf32> to vector<1x8x32xf32>
    %161 = arith.subf %144, %160 : vector<1x8x32xf32>
    %cst_70 = arith.constant 9.99999974E-6 : f32
    %162 = vector.broadcast %cst_70 : f32 to vector<1x8x1xf32>
    %163 = arith.addf %159, %162 : vector<1x8x1xf32>
    %164 = math.rsqrt %163 : vector<1x8x1xf32>
    %165 = vector.broadcast %164 : vector<1x8x1xf32> to vector<1x8x32xf32>
    %166 = arith.mulf %161, %165 : vector<1x8x32xf32>
    %167 = vector.shape_cast %146 : vector<1x32xf32> to vector<1x1x32xf32>
    %168 = vector.broadcast %167 : vector<1x1x32xf32> to vector<1x8x32xf32>
    %169 = arith.mulf %166, %168 : vector<1x8x32xf32>
    %170 = vector.shape_cast %148 : vector<1x32xf32> to vector<1x1x32xf32>
    %171 = vector.broadcast %170 : vector<1x1x32xf32> to vector<1x8x32xf32>
    %172 = arith.addf %169, %171 : vector<1x8x32xf32>
    %173 = arith.truncf %172 : vector<1x8x32xf32> to vector<1x8x32xbf16>
    %c0_71 = arith.constant 0 : index
    %c0_72 = arith.constant 0 : index
    %c0_73 = arith.constant 0 : index
    %174 = vector.load %arg10[%c0_71, %c0_72, %c0_73] : memref<1x32x128xbf16, #tpu.memory_space<vmem>>, vector<1x32x128xbf16>
    %175 = vector.shape_cast %174 : vector<1x32x128xbf16> to vector<32x128xbf16>
    "tpu.trace_start"() <{level = 10 : i32, message = "bsd,df->bsf"}> : () -> ()
    %cst_74 = arith.constant dense<0.000000e+00> : vector<1x8x128xf32>
    %176 = tpu.matmul %173, %175, %cst_74 {dimension_numbers = #tpu.dot_dimension_numbers<[2], [0], [0, 1], [1], [0, 0, 0, 1, 1, 1], [], []>} : vector<1x8x32xbf16>, vector<32x128xbf16>, vector<1x8x128xf32> -> vector<1x8x128xf32>
    "tpu.trace_stop"() : () -> ()
    %c0_75 = arith.constant 0 : index
    %c0_76 = arith.constant 0 : index
    %c0_77 = arith.constant 0 : index
    %177 = vector.load %arg11[%c0_75, %c0_76, %c0_77] : memref<1x1x128xf32, #tpu.memory_space<vmem>>, vector<1x1x128xf32>
    %178 = vector.shape_cast %177 : vector<1x1x128xf32> to vector<1x128xf32>
    %179 = vector.shape_cast %178 : vector<1x128xf32> to vector<1x1x128xf32>
    %180 = vector.broadcast %179 : vector<1x1x128xf32> to vector<1x8x128xf32>
    %181 = arith.addf %176, %180 : vector<1x8x128xf32>
    %cst_78 = arith.constant 5.000000e-01 : f32
    %182 = vector.broadcast %cst_78 : f32 to vector<1x8x128xf32>
    %183 = arith.mulf %182, %181 : vector<1x8x128xf32>
    %cst_79 = arith.constant 4.471500e-02 : f32
    %184 = vector.broadcast %cst_79 : f32 to vector<1x8x128xf32>
    %185 = arith.mulf %184, %181 : vector<1x8x128xf32>
    %186 = arith.mulf %185, %181 : vector<1x8x128xf32>
    %187 = arith.mulf %186, %181 : vector<1x8x128xf32>
    %188 = arith.addf %181, %187 : vector<1x8x128xf32>
    %cst_80 = arith.constant 0.797884583 : f32
    %189 = vector.broadcast %cst_80 : f32 to vector<1x8x128xf32>
    %190 = arith.mulf %189, %188 : vector<1x8x128xf32>
    %191 = math.tanh %190 : vector<1x8x128xf32>
    %cst_81 = arith.constant 1.000000e+00 : f32
    %192 = vector.broadcast %cst_81 : f32 to vector<1x8x128xf32>
    %193 = arith.addf %192, %191 : vector<1x8x128xf32>
    %194 = arith.mulf %183, %193 : vector<1x8x128xf32>
    %195 = arith.truncf %194 : vector<1x8x128xf32> to vector<1x8x128xbf16>
    %c0_82 = arith.constant 0 : index
    %c0_83 = arith.constant 0 : index
    %c0_84 = arith.constant 0 : index
    %196 = vector.load %arg12[%c0_82, %c0_83, %c0_84] : memref<1x128x32xbf16, #tpu.memory_space<vmem>>, vector<1x128x32xbf16>
    %197 = vector.shape_cast %196 : vector<1x128x32xbf16> to vector<128x32xbf16>
    "tpu.trace_start"() <{level = 10 : i32, message = "bsf,fd->bsd"}> : () -> ()
    %cst_85 = arith.constant dense<0.000000e+00> : vector<1x8x32xf32>
    %198 = tpu.matmul %195, %197, %cst_85 {dimension_numbers = #tpu.dot_dimension_numbers<[2], [0], [0, 1], [1], [0, 0, 0, 1, 1, 1], [], []>} : vector<1x8x128xbf16>, vector<128x32xbf16>, vector<1x8x32xf32> -> vector<1x8x32xf32>
    "tpu.trace_stop"() : () -> ()
    %c0_86 = arith.constant 0 : index
    %c0_87 = arith.constant 0 : index
    %c0_88 = arith.constant 0 : index
    %199 = vector.load %arg13[%c0_86, %c0_87, %c0_88] : memref<1x1x32xf32, #tpu.memory_space<vmem>>, vector<1x1x32xf32>
    %200 = vector.shape_cast %199 : vector<1x1x32xf32> to vector<1x32xf32>
    %201 = vector.shape_cast %200 : vector<1x32xf32> to vector<1x1x32xf32>
    %202 = vector.broadcast %201 : vector<1x1x32xf32> to vector<1x8x32xf32>
    %203 = arith.addf %198, %202 : vector<1x8x32xf32>
    %204 = arith.addf %144, %203 : vector<1x8x32xf32>
    %c0_89 = arith.constant 0 : index
    %c0_90 = arith.constant 0 : index
    %c0_91 = arith.constant 0 : index
    %205 = vector.load %arg14[%c0_89, %c0_90, %c0_91] : memref<1x8x32xf32, #tpu.memory_space<vmem>>, vector<1x8x32xf32>
    tpu.vector_store %arg14[%c0_89, %c0_90, %c0_91], %204 {strides = array<i32>} : memref<1x8x32xf32, #tpu.memory_space<vmem>>, vector<1x8x32xf32>,
    return
  }
  func.func @transform_0(%arg0: i32, %arg1: i32) -> (i32, i32, i32) {
    %c0_i32 = arith.constant 0 : i32
    %c0_i32_0 = arith.constant 0 : i32
    %c0_i32_1 = arith.constant 0 : i32
    return %arg0, %c0_i32, %c0_i32_0 : i32, i32, i32
  }
  func.func @transform_1(%arg0: i32, %arg1: i32) -> (i32, i32, i32) {
    %c0_i32 = arith.constant 0 : i32
    %c0_i32_0 = arith.constant 0 : i32
    %c0_i32_1 = arith.constant 0 : i32
    return %arg1, %c0_i32, %c0_i32_0 : i32, i32, i32
  }
  func.func @transform_2(%arg0: i32, %arg1: i32) -> (i32, i32, i32) {
    %c0_i32 = arith.constant 0 : i32
    %c0_i32_0 = arith.constant 0 : i32
    %c0_i32_1 = arith.constant 0 : i32
    return %arg1, %c0_i32, %c0_i32_0 : i32, i32, i32
  }
  func.func @transform_3(%arg0: i32, %arg1: i32) -> (i32, i32, i32) {
    %c0_i32 = arith.constant 0 : i32
    %c0_i32_0 = arith.constant 0 : i32
    %c0_i32_1 = arith.constant 0 : i32
    return %arg1, %c0_i32, %c0_i32_0 : i32, i32, i32
  }
  func.func @transform_4(%arg0: i32, %arg1: i32) -> (i32, i32, i32) {
    %c0_i32 = arith.constant 0 : i32
    %c0_i32_0 = arith.constant 0 : i32
    %c0_i32_1 = arith.constant 0 : i32
    return %arg1, %c0_i32, %c0_i32_0 : i32, i32, i32
  }
  func.func @transform_5(%arg0: i32, %arg1: i32) -> (i32, i32, i32) {
    %c0_i32 = arith.constant 0 : i32
    %c0_i32_0 = arith.constant 0 : i32
    %c0_i32_1 = arith.constant 0 : i32
    return %arg1, %c0_i32, %c0_i32_0 : i32, i32, i32
  }
  func.func @transform_6(%arg0: i32, %arg1: i32) -> (i32, i32, i32) {
    %c0_i32 = arith.constant 0 : i32
    %c0_i32_0 = arith.constant 0 : i32
    %c0_i32_1 = arith.constant 0 : i32
    return %arg1, %c0_i32, %c0_i32_0 : i32, i32, i32
  }
  func.func @transform_7(%arg0: i32, %arg1: i32) -> (i32, i32, i32) {
    %c0_i32 = arith.constant 0 : i32
    %c0_i32_0 = arith.constant 0 : i32
    %c0_i32_1 = arith.constant 0 : i32
    return %arg1, %c0_i32, %c0_i32_0 : i32, i32, i32
  }
  func.func @transform_8(%arg0: i32, %arg1: i32) -> (i32, i32, i32) {
    %c0_i32 = arith.constant 0 : i32
    %c0_i32_0 = arith.constant 0 : i32
    %c0_i32_1 = arith.constant 0 : i32
    return %arg1, %c0_i32, %c0_i32_0 : i32, i32, i32
  }
  func.func @transform_9(%arg0: i32, %arg1: i32) -> (i32, i32, i32) {
    %c0_i32 = arith.constant 0 : i32
    %c0_i32_0 = arith.constant 0 : i32
    %c0_i32_1 = arith.constant 0 : i32
    return %arg1, %c0_i32, %c0_i32_0 : i32, i32, i32
  }
  func.func @transform_10(%arg0: i32, %arg1: i32) -> (i32, i32, i32) {
    %c0_i32 = arith.constant 0 : i32
    %c0_i32_0 = arith.constant 0 : i32
    %c0_i32_1 = arith.constant 0 : i32
    return %arg1, %c0_i32, %c0_i32_0 : i32, i32, i32
  }
  func.func @transform_11(%arg0: i32, %arg1: i32) -> (i32, i32, i32) {
    %c0_i32 = arith.constant 0 : i32
    %c0_i32_0 = arith.constant 0 : i32
    %c0_i32_1 = arith.constant 0 : i32
    return %arg1, %c0_i32, %c0_i32_0 : i32, i32, i32
  }
  func.func @transform_12(%arg0: i32, %arg1: i32) -> (i32, i32, i32) {
    %c0_i32 = arith.constant 0 : i32
    %c0_i32_0 = arith.constant 0 : i32
    %c0_i32_1 = arith.constant 0 : i32
    return %arg0, %c0_i32, %c0_i32_0 : i32, i32, i32
  }
}

</mosaic_0001>

<bundles_post_ra>
// kernel: tpu_custom_call.1
= control target key start
LH: loop header
LB: loop body
LE: loop exit
PB: predicated region body
PF: predicated region fallthrough
CT: control target
= control target key end

     0   :  { %s2037_s0 = inlined_call_operand.vmem [shape: f32[2,8,32], index: 0, kind: input, shape index: {}]   ;;  %s2038_s1 = inlined_call_operand.vmem [shape: f32[2,1,32], index: 1, kind: input, shape index: {}]   ;;  %s2039_s2 = inlined_call_operand.vmem [shape: f32[2,1,32], index: 2, kind: input, shape index: {}]   ;;  %s2040_s3 = inlined_call_operand.vmem [shape: bf16[2,32,96], index: 3, kind: input, shape index: {}]   ;;  %s2041_s4 = inlined_call_operand.vmem [shape: bf16[2,32,32], index: 4, kind: input, shape index: {}]   ;;  %s2042_s5 = inlined_call_operand.vmem [shape: f32[2,1,32], index: 5, kind: input, shape index: {}]   ;;  %s2043_s6 = inlined_call_operand.vmem [shape: f32[2,1,32], index: 6, kind: input, shape index: {}]   ;;  %s2044_s7 = inlined_call_operand.vmem [shape: f32[2,1,32], index: 7, kind: input, shape index: {}]   ;;  %s2045_s8 = inlined_call_operand.vmem [shape: bf16[2,32,128], index: 8, kind: input, shape index: {}]   ;;  %s2046_s9 = inlined_call_operand.vmem [shape: f32[2,1,128], index: 9, kind: input, shape index: {}]   ;;  %s2047_s10 = inlined_call_operand.vmem [shape: bf16[2,128,32], index: 10, kind: input, shape index: {}]   ;;  %s2048_s11 = inlined_call_operand.vmem [shape: f32[2,1,32], index: 11, kind: input, shape index: {}]   ;;  %s2049_s12 = inlined_call_operand.hbm [shape: f32[2,8,32], index: 12, kind: output, shape index: {}]  }
   0x1   :  { %2065 = sst [smem:[#allocation19_spill]] %s2037_s0 }
   0x2   :  { %2066 = sst [smem:[#allocation20_spill]] %s2040_s3 }
   0x3   :  { %2067 = sst [smem:[#allocation21_spill]] %s2041_s4 }
   0x4   :  { %2068 = sst [smem:[#allocation22_spill]] %s2049_s12 }
   0x5   :  { %17 = vsyncpa [#allocation4], 0 }
   0x6   :  { %19 = vsyncpa [#allocation4 + $0x1], 0  ;;  %s1741_s21 = smov 0   ;;  %s1743_s22 = smov 0  }
   0x7   :  { %s1745_s23 = smov 0   ;;  %s1747_s24 = smov 0  }
   0x8   :  { %s1749_s25 = smov 0   ;;  %s1751_s26 = smov 0  }
   0x9   :  { %s1753_s27 = smov 0   ;;  %s1755_s28 = smov 0  }
   0xa LB: > { %2069 = sst [smem:[#allocation6_spill]] %s1631_s21  ;;  %s1343_s29 = sadd.s32 4294967295, %s1659_s28   ;;  %s1659_s28 = sphi %s1755_s28, %s25_s28   ;;  %s1655_s27 = sphi %s1753_s27, %s2106_s27   ;;  %s1651_s26 = sphi %s1751_s26, %s2105_s26   ;;  %s1647_s25 = sphi %s1749_s25, %s2104_s25   ;;  %s1643_s24 = sphi %s1747_s24, %s2103_s24   ;;  %s1639_s23 = sphi %s1745_s23, %s2102_s23   ;;  %s1635_s22 = sphi %s1743_s22, %s2101_s22   ;;  %s1631_s21 = sphi %s1741_s21, %s2100_s21  }
   0xb   : > { %2070 = sst [smem:[#allocation7_spill]] %s1635_s22  ;;  %s1344_s30 = sadd.s32 4294967294, %s1659_s28  }
   0xc   : > { %2071 = sst [smem:[#allocation8_spill]] %s1639_s23  ;;  %s34_s13 = sadd.s32 1, %s1651_s26 }
   0xd   : > { %2072 = sst [smem:[#allocation9_spill]] %s1643_s24  ;;  %p35_p0 = scmp.ge.s32.totalorder %s34_s13, 2 }
   0xe   : > { %2073 = sst [smem:[#allocation10_spill]] %s1647_s25  ;;  %s37_s14 = sadd.s32 1, %s1655_s27 }
   0xf   : > { %2074 = sst [smem:[#allocation11_spill]] %s1651_s26  ;;  %p366_p1 = scmp.ne.s32.totalorder %s1639_s23, %s1635_s22 }
  0x10   : > { %2075 = sst [smem:[#allocation12_spill]] %s1655_s27  ;;  %p367_p2 = scmp.eq.s32.totalorder %s1343_s29, 3 }
  0x11   : > { %2076 = sst [smem:[#allocation13_spill]] %s1659_s28  ;;  %s2108_s13 = smov (%p35_p0, %s34_s13), 0 }
  0x12   : > { %2077 = sst [smem:[#allocation14_spill]] %s2108_s13  ;;  %s2110_s14 = smov (!%p35_p0, %s37_s14), %s1655_s27 }
  0x13   : > { %p1790_p3 = por %p367_p2, %p366_p1  ;;  %p372_p4 = scmp.ne.s32.totalorder %s1635_s22, %s1631_s21 }
  0x14   : > { %p39_p5 = scmp.ge.s32.totalorder %s2110_s14, 2  ;;  %p373_p6 = scmp.eq.s32.totalorder %s1344_s30, 3 }
  0x15   : > { %s2078_s15 = scalar_select %p1790_p3, 1, 0 }
  0x16   : > { %p1347_p7 = scmp.ge.s32.totalorder %s1659_s28, 1  ;;  %p472_p8 = scmp.lt.s32.totalorder %s1659_s28, 5 }
  0x17   : > { %2079 = sst [smem:[#allocation15_spill]] %s2078_s15  ;;  %s2112_s14 = smov (%p39_p5, %s2110_s14), 0 }
  0x18   : > { %2080 = sst [smem:[#allocation16_spill]] %s2112_s14  ;;  %p1800_p9 = por %p373_p6, %p372_p4 }
  0x19   : > { %p473_p10 = pnand %p1347_p7, %p472_p8  ;;  %s353_s17 = ssub.s32 %s1655_s27, %s2112_s14 }
  0x1a   : > { %s2081_s16 = scalar_select %p1800_p9, 1, 0 }
  0x1b   : > { %s356_s18 = sadd.s32 1, %s1639_s23  ;;  %p354_p11 = scmp.eq.s32.totalorder %s353_s17, 0 }
  0x1c   : > { %2082 = sst [smem:[#allocation17_spill]] %s2081_s16  ;;  %476 = sbr.rel (%p473_p10) target bundleno = 2370 (0x942), region = 68 }
  0x1d   : > { %s1808_s19 = scalar_select %p354_p11, %s1639_s23, %s356_s18  }
  0x1e   : > { %s2053_s20 = sand.u32 (!%p473_p10), 1, %s1635_s22   ;;  %p554_p12 = scmp.lt.s32.totalorder (!%p473_p10), %s1647_s25, 1 }
  0x1f   : > { %2083 = sst [smem:[#allocation18_spill]] %s1808_s19  ;;  %s1348_s29 = sshll.u32 (!%p473_p10), %s2053_s20, 3 }
  0x20   : > { %p558_p13 = scmp.lt.s32.totalorder (!%p473_p10), %s1643_s24, 1  ;;  %s2084_s0 = sld [smem:[#allocation19_spill]] (!%p473_p10) }
  0x21   : > { %s555_s30 = scalar_select %p554_p12, %s1647_s25, 1 }
  0x22   : > { %s1817_s13 = scalar_select %p558_p13, %s1643_s24, 1 }
  0x23   : > { %s1349_s17 = sshll.u32 %s555_s30, 3  ;;  %s2085_s3 = sld [smem:[#allocation20_spill]] }
  0x24   : > { %s1430_s28 = sshll.u32 %s1817_s13, 4  ;;  %s2086_s4 = sld [smem:[#allocation21_spill]] }
  0x25   : > { %s579_s23 = scalar_lea.vmem %s2043_s6, %s1817_s13  ;;  %s598_s21 = scalar_lea.vmem %s2048_s11, %s1817_s13 }
  0x26   : > { %s557_s27 = scalar_lea.vmem %s2084_s0, %s1349_s17  ;;  %s1856_s0 = scalar_lea.vmem %s2045_s8, %s1430_s28 }
  0x27   : > { %s1872_s16 = scalar_lea.vmem [#allocation3], %s1348_s29  ;;  %s2087_s19 = sld [smem:[#allocation9_spill]] }
  0x29   : > { %s1834_s22 = scalar_lea.vmem %s2085_s3, %s1430_s28  ;;  %s590_s3 = scalar_lea.vmem %s2046_s9, %s1817_s13 }
  0x2a   : > { %s1839_s24 = scalar_lea.vmem %s2086_s4, %s1430_s28  ;;  %s1433_s4 = sshll.u32 %s1817_s13, 6 }
  0x2b   : > { %s1866_s26 = scalar_lea.vmem %s2047_s10, %s1433_s4 }
  0x2d   : > { %p1358_p0 = scmp.ne.s32.totalorder %s2087_s19, 0 }
  0x2f   : > { %603 = sbr.rel (%p1358_p0) target bundleno = 54 (0x36), region = 72 }
  0x34   : > { %v604_v0 = vld [vmem:[%s557_s27] sm:$0xff]  ;;  %vm605_vm0 = vcmask 261120  }
  0x35   : > { %606 = vst.msk [vmem:[%s1872_s16] sm:$0xff] %vm605_vm0, %v604_v0 }
  0x36 PF: > { %vm610_vm1 = vcmask 261120   ;;  %v1661_v3 = vmov 32.0   ;;  %v1435_v15 = vld [vmem:[%s1834_s22 + $0x8] sm:$0xff]  ;;  %v1434_v16 = vld [vmem:[%s1834_s22] sm:$0xff]  ;;  %s2088_s22 = scalar_lea.vmem %s2038_s1, %s1817_s13  ;;  %s2089_s29 = scalar_lea.vmem %s2039_s2, %s1817_s13  ;;  %vm731_vm6 = vcmask 1043456   ;;  %vm692_vm7 = vcmask 64512  }
  0x37   : > { %1541 = vrcp.f32 %v1661_v3  ;;  %674 = vmatpush.bf16.msra.mxu0 %v1435_v15  ;;  %v1534_v26 = vld [vmem:[%s2088_s22] ss:$0 sm:$0xff]  ;;  %s1662_s12 = smov 88   ;;  %s1663_s15 = smov 64   ;;  %v682_v48 = vlaneseq  ;;  %vm749_vm9 = vcmask 60416   ;;  %vm814_vm10 = vcmask 126016  }
  0x38   : > { %v1535_v29 = vld [vmem:[%s2089_s29] ss:$0 sm:$0xff]  ;;  %s1664_s25 = smov 96   ;;  %s1665_s30 = smov 72   ;;  %vm879_vm11 = vcmask 191616   ;;  %vm944_vm12 = vcmask 257216  }
  0x39   : > { %s1666_s14 = smov 80   ;;  %v683_v49 = vshrl.u32 %v682_v48, 7  ;;  %v685_v50 = vand.u32 127, %v682_v48  ;;  %s1667_s17 = smov 120  }
  0x3a   : > { %s1668_s20 = smov 104   ;;  %s1669_s18 = smov 112  }
  0x3b   : > { %675 = vmatpush.bf16.msra.mxu0 %v1434_v16  ;;  %vm686_vm8 = vcmp.le.s32.totalorder %v685_v50, %v683_v49  ;;  %s1670_s4 = smov 40   ;;  %s1671_s27 = smov 48  }
  0x3c   : > { %v1877_v1 = vld [vmem:[%s1872_s16] sm:$0xff]  ;;  %s1672_s22 = smov 56   ;;  %s1673_s28 = smov 16  }
  0x3d   : > { %v611_v2 = vsel %vm610_vm1, %v1877_v1, 0.0  ;;  %v1542_v4 = vpop.eup %1541  ;;  %s1674_s19 = smov 8   ;;  %s1675_s29 = smov 24  }
  0x3e   : > { %612 = vadd.xlane.f32.xlu0 %v611_v2  ;;  %v615_v5 = vmul.f32 32.0, %v1542_v4  ;;  %vm619_vm2 = vweird.f32 %v1542_v4 }
  0x40   : > { %v616_v6 = vsub.f32 1.0, %v615_v5 }
  0x42   : > { %v617_v7 = vmul.f32 %v1542_v4, %v616_v6 }
  0x44   : > { %v618_v8 = vadd.f32 %v1542_v4, %v617_v7 }
  0x46   : > { %v1881_v9 = vsel %vm619_vm2, %v1542_v4, %v618_v8 }
  0xb1   : > { %v613_v10 = vpop.xlane.xlu0 %612 }
  0xb2   : > { %v621_v11 = vmul.f32 %v1881_v9, %v613_v10 }
  0xb4   : > { %v622_v12 = vsub.f32 %v1877_v1, %v621_v11 }
  0xb6   : > { %v623_v13 = vmul.f32 %v622_v12, %v622_v12 }
  0xb8   : > { %v624_v14 = vsel %vm610_vm1, %v623_v13, 0.0 }
  0xb9   : > { %625 = vadd.xlane.f32.xlu0 %v624_v14 }
 0x12c   : > { %v626_v17 = vpop.xlane.xlu0 %625 }
 0x12d   : > { %v627_v18 = vmul.f32 %v626_v17, %v1881_v9 }
 0x12f   : > { %v628_v19 = vadd.f32 1e-05, %v627_v18 }
 0x131   : > { %1543 = vrsqrt.f32 %v628_v19  ;;  %vm635_vm4 = vweird.f32 %v628_v19 }
 0x137   : > { %v1544_v20 = vpop.eup %1543 }
 0x138   : > { %v630_v21 = vmul.f32 %v1544_v20, %v628_v19  ;;  %vm636_vm3 = vweird.f32 %v1544_v20 }
 0x139   : > { %vm637_vm5 = vmor %vm635_vm4, %vm636_vm3 }
 0x13a   : > { %v631_v22 = vmul.f32 %v1544_v20, %v630_v21 }
 0x13c   : > { %v632_v23 = vmul.f32 0.5, %v631_v22 }
 0x13e   : > { %v633_v24 = vsub.f32 1.5, %v632_v23 }
 0x140   : > { %v634_v25 = vmul.f32 %v1544_v20, %v633_v24 }
 0x142   : > { %v638_v27 = vsel %vm637_vm5, %v1544_v20, %v634_v25 }
 0x143   : > { %v639_v28 = vmul.f32 %v638_v27, %v622_v12 }
 0x145   : > { %v643_v30 = vmul.f32 %v1534_v26, %v639_v28 }
 0x147   : > { %v647_v31 = vadd.f32 %v1535_v29, %v643_v30 }
 0x149   : > { %v648_v32 = vpack.c.bf16 %v647_v31, %v647_v31 }
 0x14b   : > { %1367 = vmatmul.msk.bf16.vlgmr.msra.gmra.mxu0 %vm610_vm1, %v648_v32 }
 0x1c8   : > { %v677_v33 = vpop.f32.mrf.mxu0 }
 0x1c9   : > { %v681_v34 = vpack.c.bf16 %v677_v33, %v677_v33 }
 0x1cb   : > { %v688_v35 = vunpack.c.l.b16 %v681_v34 }
 0x1cd   : > { %v1900_v36 = vpack.c.b16 %v688_v35, %v688_v35 }
 0x1cf   : > { %753 = vrot.lane.b32.xlu0 %v1900_v36, %s1662_s12  ;;  %726 = vrot.lane.b32.xlu2 %v1900_v36, %s1663_s15  ;;  %s1159_s15 = sshll.u32 %s1872_s16, 4  ;;  %s1160_s15 = int_to_ptr.vmem [resolvable:$true] %s1159_s15 }
 0x1d0   : > { %690 = vrot.lane.b32.xlu1 %v1900_v36, %s1664_s25  ;;  %v679_v37 = vpop.f32.mrf.mxu0  ;;  %s2090_s25 = scalar_lea.vmem %s2042_s5, %s1817_s13 }
 0x1d7   : > { %883 = vrot.lane.b32.xlu0 %v1900_v36, %s1665_s30 }
 0x1df   : > { %818 = vrot.lane.b32.xlu0 %v1900_v36, %s1666_s14 }
 0x229   : > { %v727_v38 = vpop.permute.xlu2 %726 }
 0x22a   : > { %v733_v39 = vsel %vm731_vm6, %v727_v38, 0 }
 0x22b   : > { %742 = vmatpush.bf16.msra.mxu2 %v733_v39 }
 0x241   : > { %v754_v40 = vpop.permute.xlu0 %753 }
 0x242   : > { %v691_v41 = vpop.permute.xlu1 %690  ;;  %v759_v42 = vsel %vm692_vm7, %v754_v40, 0 }
 0x243   : > { %v697_v43 = vsel %vm692_vm7, %v691_v41, 0  ;;  %768 = vmatpush.bf16.xpose.msrb.mxu2 %v759_v42 }
 0x244   : > { %706 = vmatpush.bf16.xpose.msra.mxu1 %v697_v43 }
 0x249   : > { %v884_v44 = vpop.permute.xlu0 %883 }
 0x24a   : > { %v889_v45 = vsel %vm692_vm7, %v884_v44, 0 }
 0x24b   : > { %1368 = vmatmul.msk.bf16.vlgmr.msra.gmra.mxu1 %vm692_vm7, %v681_v34  ;;  %898 = vmatpush.bf16.xpose.msra.mxu3 %v889_v45 }
 0x251   : > { %v819_v46 = vpop.permute.xlu0 %818 }
 0x252   : > { %v824_v47 = vsel %vm692_vm7, %v819_v46, 0 }
 0x253   : > { %833 = vmatpush.bf16.xpose.msrb.mxu0 %v824_v47 }
 0x2c8   : > { %v708_v51 = vpop.f32.mrf.mxu1 }
 0x2c9   : > { %v712_v52 = vmul.f32 0.35355338, %v708_v51 }
 0x2cb   : > { %v713_v53 = vsel %vm686_vm8, %v712_v52, -1e+30 }
 0x2cc   : > { %v714_v54 = vsel %vm692_vm7, %v713_v53, -inf }
 0x2cd   : > { %715 = vmax.xlane.f32.xlu1 %v714_v54 }
 0x2d0   : > { %v710_v55 = vpop.f32.mrf.mxu1 }
 0x340   : > { %v716_v56 = vpop.xlane.xlu1 %715 }
 0x341   : > { %v717_v57 = vsub.f32 %v713_v53, %v716_v56 }
 0x343   : > { %v718_v58 = vmul.f32 1.442695, %v717_v57 }
 0x345   : > { %1545 = vpow2.f32 %v718_v58 }
 0x34b   : > { %v1546_v59 = vpop.eup %1545 }
 0x34c   : > { %v720_v60 = vsel %vm692_vm7, %v1546_v59, 0.0 }
 0x34d   : > { %721 = vadd.xlane.f32.xlu2 %v720_v60 }
 0x365   : > { %751 = vrot.lane.b32.xlu2 %v1900_v36, %s1667_s17  ;;  %s2091_s17 = scalar_lea.vmem %s2044_s7, %s1817_s13 }
 0x36d   : > { %881 = vrot.lane.b32.xlu2 %v1900_v36, %s1668_s20 }
 0x375   : > { %816 = vrot.lane.b32.xlu2 %v1900_v36, %s1669_s18  ;;  %s2092_s18 = sld [smem:[#allocation10_spill]] }
 0x3c0   : > { %v722_v61 = vpop.xlane.xlu2 %721 }
 0x3c1   : > { %1547 = vrcp.f32 %v722_v61 }
 0x3c7   : > { %v1548_v62 = vpop.eup %1547 }
 0x3c8   : > { %v752_v63 = vpop.permute.xlu2 %751  ;;  %v724_v0 = vmul.f32 %v1548_v62, %v1546_v59 }
 0x3ca   : > { %v725_v2 = vpack.c.bf16 %v724_v0, %v724_v0 }
 0x3cc   : > { %1369 = vmatmul.msk.bf16.vlgmr.msra.gmra.mxu2 %vm692_vm7, %v725_v2 }
 0x3d0   : > { %v882_v3 = vpop.permute.xlu2 %881 }
 0x3d1   : > { %1374 = vmatmul.msk.bf16.vlgmr.msra.gmra.mxu3 %vm692_vm7, %v882_v3  ;;  %v1437_v3 = vld [vmem:[%s1839_s24 + $0x8] sm:$0xff] }
 0x3d2   : > { %976 = vmatpush.bf16.msra.mxu0 %v1437_v3 }
 0x3d8   : > { %v817_v4 = vpop.permute.xlu2 %816 }
 0x3d9   : > { %1372 = vmatmul.msk.bf16.vlgmr.msrb.gmra.mxu0 %vm692_vm7, %v817_v4 }
 0x3dc   : > { %1370 = vmatmul.msk.bf16.vlgmr.msrb.gmra.mxu2 %vm692_vm7, %v752_v63 }
 0x44f   : > { %v744_v5 = vpop.f32.mrf.mxu2 }
 0x450   : > { %v748_v6 = vpack.c.bf16 %v744_v5, %v744_v5 }
 0x452   : > { %750 = vst.msk [vmem:[#allocation2] sm:$0xf] %vm749_vm9, %v748_v6  ;;  %v1436_v6 = vld [vmem:[%s1839_s24] sm:$0xff] }
 0x453   : > { %977 = vmatpush.bf16.msra.mxu0 %v1436_v6 }
 0x454   : > { %v900_v7 = vpop.f32.mrf.mxu3 }
 0x455   : > { %v904_v8 = vmul.f32 0.35355338, %v900_v7 }
 0x456   : > { %v835_v10 = vpop.f32.mrf.mxu0 }
 0x457   : > { %v839_v11 = vmul.f32 0.35355338, %v835_v10  ;;  %v746_v12 = vpop.f32.mrf.mxu2  ;;  %v905_v13 = vsel %vm686_vm8, %v904_v8, -1e+30  ;;  %v1536_v10 = vld [vmem:[%s2090_s25] ss:$0 sm:$0xff] }
 0x458   : > { %v906_v14 = vsel %vm692_vm7, %v905_v13, -inf }
 0x459   : > { %907 = vmax.xlane.f32.xlu0 %v906_v14  ;;  %v840_v15 = vsel %vm686_vm8, %v839_v11, -1e+30 }
 0x45a   : > { %v841_v16 = vsel %vm692_vm7, %v840_v15, -inf }
 0x45b   : > { %842 = vmax.xlane.f32.xlu2 %v841_v16 }
 0x45c   : > { %v902_v17 = vpop.f32.mrf.mxu3 }
 0x45e   : > { %v837_v18 = vpop.f32.mrf.mxu0 }
 0x45f   : > { %v770_v19 = vpop.f32.mrf.mxu2 }
 0x460   : > { %v774_v20 = vmul.f32 0.35355338, %v770_v19 }
 0x462   : > { %v775_v21 = vsel %vm686_vm8, %v774_v20, -1e+30 }
 0x463   : > { %v776_v22 = vsel %vm692_vm7, %v775_v21, -inf }
 0x464   : > { %777 = vmax.xlane.f32.xlu1 %v776_v22  ;;  %v1438_v22 = vld [vmem:[%s1856_s0] sm:$0xff] }
 0x467   : > { %v772_v23 = vpop.f32.mrf.mxu2 }
 0x473   : > { %918 = vrot.lane.b32.xlu2 %v1900_v36, %s1670_s4 }
 0x4cc   : > { %v908_v34 = vpop.xlane.xlu0 %907 }
 0x4cd   : > { %v909_v35 = vsub.f32 %v905_v13, %v908_v34 }
 0x4ce   : > { %v843_v24 = vpop.xlane.xlu2 %842 }
 0x4cf   : > { %v844_v25 = vsub.f32 %v840_v15, %v843_v24  ;;  %v910_v37 = vmul.f32 1.442695, %v909_v35  ;;  %v1538_v35 = vld [vmem:[%s2091_s17] ss:$0 sm:$0xff] }
 0x4d1   : > { %v845_v26 = vmul.f32 1.442695, %v844_v25  ;;  %v1446_v25 = vld [vmem:[%s1866_s26 + $0x30] sm:$0xff] }
 0x4d3   : > { %1549 = vpow2.f32 %v845_v26 }
 0x4d6   : > { %v919_v47 = vpop.permute.xlu2 %918 }
 0x4d7   : > { %v778_v27 = vpop.xlane.xlu1 %777  ;;  %v924_v51 = vsel %vm731_vm6, %v919_v47, 0 }
 0x4d8   : > { %v779_v28 = vsub.f32 %v775_v21, %v778_v27  ;;  %v1439_v21 = vld [vmem:[%s1856_s0 + $0x8] sm:$0xff] }
 0x4d9   : > { %v1550_v29 = vpop.eup %1549 }
 0x4da   : > { %v780_v30 = vmul.f32 1.442695, %v779_v28  ;;  %v847_v31 = vsel %vm692_vm7, %v1550_v29, 0.0 }
 0x4db   : > { %848 = vadd.xlane.f32.xlu0 %v847_v31 }
 0x4dc   : > { %1551 = vpow2.f32 %v780_v30 }
 0x4dd   : > { %1553 = vpow2.f32 %v910_v37 }
 0x4e2   : > { %v1552_v32 = vpop.eup %1551 }
 0x4e3   : > { %v782_v33 = vsel %vm692_vm7, %v1552_v32, 0.0  ;;  %v1554_v38 = vpop.eup %1553 }
 0x4e4   : > { %783 = vadd.xlane.f32.xlu1 %v782_v33  ;;  %v912_v39 = vsel %vm692_vm7, %v1554_v38, 0.0 }
 0x4ef   : > { %853 = vrot.lane.b32.xlu0 %v1900_v36, %s1671_s27 }
 0x4fd   : > { %788 = vrot.lane.b32.xlu1 %v1900_v36, %s1672_s22 }
 0x527   : > { %913 = vadd.xlane.f32.xlu1 %v912_v39 }
 0x54e   : > { %v849_v40 = vpop.xlane.xlu0 %848 }
 0x54f   : > { %1555 = vrcp.f32 %v849_v40  ;;  %v1445_v40 = vld [vmem:[%s1866_s26 + $0x28] sm:$0xff] }
 0x555   : > { %v1556_v41 = vpop.eup %1555 }
 0x556   : > { %v851_v42 = vmul.f32 %v1556_v41, %v1550_v29  ;;  %v1444_v41 = vld [vmem:[%s1866_s26 + $0x20] sm:$0xff] }
 0x557   : > { %v784_v44 = vpop.xlane.xlu1 %783 }
 0x558   : > { %v852_v46 = vpack.c.bf16 %v851_v42, %v851_v42  ;;  %1557 = vrcp.f32 %v784_v44  ;;  %v1443_v42 = vld [vmem:[%s1866_s26 + $0x18] sm:$0xff]  ;;  %v1441_v44 = vld [vmem:[%s1866_s26 + $0x8] sm:$0xff] }
 0x55e   : > { %v1558_v36 = vpop.eup %1557 }
 0x55f   : > { %v786_v48 = vmul.f32 %v1558_v36, %v1552_v32 }
 0x561   : > { %v854_v43 = vpop.permute.xlu0 %853  ;;  %v787_v52 = vpack.c.bf16 %v786_v48, %v786_v48 }
 0x562   : > { %v859_v45 = vsel %vm731_vm6, %v854_v43, 0  ;;  %v1442_v43 = vld [vmem:[%s1866_s26 + $0x10] sm:$0xff] }
 0x563   : > { %868 = vmatpush.bf16.msrb.mxu1 %v859_v45  ;;  %v1440_v45 = vld [vmem:[%s1866_s26] sm:$0xff] }
 0x566   : > { %1373 = vmatmul.msk.bf16.vlgmr.msrb.gmra.mxu1 %vm692_vm7, %v852_v46  ;;  %v1539_v46 = vld [vmem:[%s590_s3] ss:$0 sm:$0xff]  ;;  %s1427_s3 = sshll.u32 %s2092_s18, 3 }
 0x567   : > { %1046 = vmatpush.bf16.msra.mxu1 %v1439_v21 }
 0x56b   : > { %1047 = vmatpush.bf16.msra.mxu1 %v1438_v22 }
 0x56f   : > { %v789_v49 = vpop.permute.xlu1 %788 }
 0x570   : > { %v794_v50 = vsel %vm731_vm6, %v789_v49, 0 }
 0x571   : > { %803 = vmatpush.bf16.msra.mxu2 %v794_v50 }
 0x574   : > { %1371 = vmatmul.msk.bf16.vlgmr.msra.gmra.mxu2 %vm692_vm7, %v787_v52 }
 0x575   : > { %933 = vmatpush.bf16.msrb.mxu2 %v924_v51 }
 0x59a   : > { %v914_v53 = vpop.xlane.xlu1 %913 }
 0x59b   : > { %1559 = vrcp.f32 %v914_v53 }
 0x5a1   : > { %v1560_v54 = vpop.eup %1559 }
 0x5a2   : > { %v916_v55 = vmul.f32 %v1560_v54, %v1554_v38 }
 0x5a4   : > { %v917_v56 = vpack.c.bf16 %v916_v55, %v916_v55 }
 0x5a6   : > { %1375 = vmatmul.msk.bf16.vlgmr.msrb.gmra.mxu2 %vm692_vm7, %v917_v56 }
 0x5e3   : > { %v870_v57 = vpop.f32.mrf.mxu1 }
 0x5e4   : > { %v874_v58 = vpack.c.bf16 %v870_v57, %v870_v57 }
 0x5e6   : > { %876 = vrot.lane.b32.xlu0 %v874_v58, %s1673_s28 }
 0x5eb   : > { %v872_v59 = vpop.f32.mrf.mxu1 }
 0x5ec   : > { %v1540_v59 = vld [vmem:[%s598_s21] ss:$0 sm:$0xff] }
 0x5f7   : > { %v805_v60 = vpop.f32.mrf.mxu2 }
 0x5f8   : > { %v809_v61 = vpack.c.bf16 %v805_v60, %v805_v60 }
 0x5fa   : > { %811 = vrot.lane.b32.xlu2 %v809_v61, %s1674_s19 }
 0x5ff   : > { %v807_v62 = vpop.f32.mrf.mxu2 }
 0x629   : > { %v935_v63 = vpop.f32.mrf.mxu2 }
 0x62a   : > { %v939_v0 = vpack.c.bf16 %v935_v63, %v935_v63 }
 0x62c   : > { %941 = vrot.lane.b32.xlu2 %v939_v0, %s1675_s29  ;;  %s2095_s29 = sld [smem:[#allocation22_spill]] }
 0x631   : > { %v937_v2 = vpop.f32.mrf.mxu2 }
 0x632   : > { %s1157_s12 = scalar_lea.hbm %s2095_s29, %s1427_s3  ;;  %s1585_s17 = scalar_lea.hbm %s2095_s29, 16 }
 0x633   : > { %s1161_s25 = sshll.u32 %s1157_s12, 4  ;;  %s1162_s25 = int_to_ptr.hbm [resolvable:$true] %s1161_s25 }
 0x634   : > { %s1579_s30 = sshra.s32 %s1162_s25, 4  ;;  %s1580_s30 = int_to_ptr.hbm [resolvable:$true] %s1579_s30 }
 0x635   : > { %s1581_s13 = scalar_lea.hbm %s1580_s30, 8  ;;  %p1586_p5 = scmp.lt.s32.totalorder %s1580_s30, %s2095_s29 }
 0x636   : > { %p1582_p1 = scmp.ne.s32.totalorder %s1580_s30, %s1581_s13  ;;  %p1587_p6 = scmp.lt.s32.totalorder %s1585_s17, %s1581_s13 }
 0x638   : > { %p1583_p2 = pnand %p1582_p1, %p1790_p3  ;;  %p1588_p7 = por %p1587_p6, %p1586_p5 }
 0x63a   : > { %p1584_p4 = pneg %p1583_p2 }
 0x63c   : > { %p1589_p8 = pnand %p1588_p7, %p1584_p4 }
 0x654   : > { %v812_v4 = vpop.permute.xlu2 %811 }
 0x655   : > { %815 = vst.msk [vmem:[#allocation2] sm:$0xf] %vm814_vm10, %v812_v4 }
 0x658   : > { %v877_v5 = vpop.permute.xlu0 %876 }
 0x659   : > { %880 = vst.msk [vmem:[#allocation2] sm:$0xf] %vm879_vm11, %v877_v5 }
 0x686   : > { %v942_v7 = vpop.permute.xlu2 %941 }
 0x687   : > { %945 = vst.msk [vmem:[#allocation2] sm:$0xf] %vm944_vm12, %v942_v7 }
 0x68e   : > { %v946_v8 = vld [vmem:[#allocation2] sm:$0xf] }
 0x68f   : > { %1384 = vmatmul.msk.bf16.vlgmr.msra.gmra.mxu0 %vm610_vm1, %v946_v8 }
 0x70c   : > { %v979_v11 = vpop.f32.mrf.mxu0 }
 0x70d   : > { %v980_v12 = vadd.f32 %v1536_v10, %v979_v11 }
 0x70f   : > { %v1950_v13 = vadd.f32 %v980_v12, %v1877_v1  ;;  %v1447_v1 = vld [vmem:[%s1866_s26 + $0x38] sm:$0xff]  ;;  %s2093_s26 = sld [smem:[#allocation7_spill]] }
 0x710   : > { %1131 = vmatpush.bf16.msrb.mxu3 %v1447_v1 }
 0x711   : > { %v986_v14 = vsel %vm610_vm1, %v1950_v13, 0.0 }
 0x712   : > { %987 = vadd.xlane.f32.xlu0 %v986_v14 }
 0x714   : > { %v981_v15 = vpop.f32.mrf.mxu0  ;;  %1132 = vmatpush.bf16.msrb.mxu3 %v1446_v25 }
 0x715   : > { %s2096_s0 = sand.u32 1, %s2093_s26  }
 0x716   : > { %s1147_s24 = scalar_lea.sflag [#allocation4], %s2096_s0 }
 0x718   : > { %1133 = vmatpush.bf16.msrb.mxu3 %v1445_v40 }
 0x71c   : > { %1134 = vmatpush.bf16.msrb.mxu3 %v1444_v41 }
 0x720   : > { %1135 = vmatpush.bf16.msrb.mxu3 %v1443_v42 }
 0x724   : > { %1136 = vmatpush.bf16.msrb.mxu3 %v1442_v43 }
 0x728   : > { %1137 = vmatpush.bf16.msrb.mxu3 %v1441_v44 }
 0x72c   : > { %1138 = vmatpush.bf16.msrb.mxu3 %v1440_v45 }
 0x785   : > { %v988_v16 = vpop.xlane.xlu0 %987 }
 0x786   : > { %v989_v17 = vmul.f32 %v988_v16, %v1881_v9 }
 0x788   : > { %v990_v18 = vsub.f32 %v1950_v13, %v989_v17 }
 0x78a   : > { %v991_v19 = vmul.f32 %v990_v18, %v990_v18 }
 0x78c   : > { %v992_v20 = vsel %vm610_vm1, %v991_v19, 0.0 }
 0x78d   : > { %993 = vadd.xlane.f32.xlu1 %v992_v20 }
 0x800   : > { %v994_v23 = vpop.xlane.xlu1 %993 }
 0x801   : > { %v995_v24 = vmul.f32 %v994_v23, %v1881_v9  ;;  %v1537_v9 = vld [vmem:[%s579_s23] ss:$0 sm:$0xff] }
 0x803   : > { %v996_v26 = vadd.f32 1e-05, %v995_v24 }
 0x805   : > { %1561 = vrsqrt.f32 %v996_v26  ;;  %vm1003_vm14 = vweird.f32 %v996_v26 }
 0x80b   : > { %v1562_v27 = vpop.eup %1561 }
 0x80c   : > { %v998_v28 = vmul.f32 %v1562_v27, %v996_v26  ;;  %vm1004_vm13 = vweird.f32 %v1562_v27 }
 0x80d   : > { %vm1005_vm15 = vmor %vm1003_vm14, %vm1004_vm13 }
 0x80e   : > { %v999_v29 = vmul.f32 %v1562_v27, %v998_v28 }
 0x810   : > { %v1000_v30 = vmul.f32 0.5, %v999_v29 }
 0x812   : > { %v1001_v31 = vsub.f32 1.5, %v1000_v30 }
 0x814   : > { %v1002_v32 = vmul.f32 %v1562_v27, %v1001_v31 }
 0x816   : > { %v1006_v33 = vsel %vm1005_vm15, %v1562_v27, %v1002_v32 }
 0x817   : > { %v1007_v34 = vmul.f32 %v1006_v33, %v990_v18 }
 0x819   : > { %v1011_v37 = vmul.f32 %v1537_v9, %v1007_v34 }
 0x81b   : > { %v1015_v38 = vadd.f32 %v1538_v35, %v1011_v37 }
 0x81d   : > { %v1016_v39 = vpack.c.bf16 %v1015_v38, %v1015_v38 }
 0x81f   : > { %1393 = vmatmul.msk.bf16.vlgmr.msra.gmra.mxu1 %vm610_vm1, %v1016_v39 }
 0x89c   : > { %v1049_v36 = vpop.f32.mrf.mxu1 }
 0x89d   : > { %v1050_v47 = vadd.f32 %v1539_v46, %v1049_v36 }
 0x89f   : > { %v1054_v48 = vmul.f32 0.044715, %v1050_v47  ;;  %v1053_v55 = vmul.f32 0.5, %v1050_v47 }
 0x8a1   : > { %v1055_v49 = vmul.f32 %v1054_v48, %v1050_v47 }
 0x8a3   : > { %v1056_v50 = vmul.f32 %v1055_v49, %v1050_v47 }
 0x8a4   : > { %v1051_v51 = vpop.f32.mrf.mxu1 }
 0x8a5   : > { %v1057_v52 = vadd.f32 %v1056_v50, %v1050_v47 }
 0x8a7   : > { %v1058_v53 = vmul.f32 0.7978846, %v1057_v52 }
 0x8a9   : > { %1563 = vtanh.f32 %v1058_v53 }
 0x8af   : > { %v1564_v54 = vpop.eup %1563 }
 0x8b0   : > { %v1060_v56 = vadd.f32 1.0, %v1564_v54 }
 0x8b2   : > { %v1061_v57 = vmul.f32 %v1060_v56, %v1053_v55 }
 0x8b4   : > { %v1062_v58 = vpack.c.bf16 %v1061_v57, %v1061_v57 }
 0x8b6   : > { %1139 = vmatmul.bf16.vlgmr.msrb.gmra.mxu3 %v1062_v58 }
 0x939   : > { %v1140_v60 = vpop.f32.mrf.mxu3 }
 0x93a   : > { %v1141_v61 = vadd.f32 %v1540_v59, %v1140_v60 }
 0x93c   : > { %v1144_v62 = vadd.f32 %v1141_v61, %v1950_v13 }
 0x93e   : > { %1145 = vst.msk [vmem:[%s1872_s16] sm:$0xff] %vm610_vm1, %v1144_v62 }
 0x93f   : > { %1592 = shalt.err (!%p1589_p8)
}
 0x940   : > { %1448 = dma.vmem_to_hbm [thread:$0]  (%p1790_p3), %s1160_s15, 128, %s1162_s25, %s1147_s24  }
 0x941   : > { %v1142_v63 = vpop.f32.mrf.mxu3 }
 0x942 PF: > { %s2097_s16 = sld [smem:[#allocation13_spill]] }
 0x943   : > { %s2098_s18 = sld [smem:[#allocation6_spill]] }
 0x948   : > { %p1454_p10 = scmp.ge.s32.totalorder %s2097_s16, 2 }
 0x949   : > { %s1173_s3 = sand.u32 1, %s2098_s18  }
 0x94a   : > { %p1451_p11 = pnand %p1454_p10, %p1800_p9  ;;  %s1174_s4 = scalar_lea.sflag [#allocation4], %s1173_s3 }
 0x94c   : > { %p1452_p12 = pneg %p1451_p11 }
 0x94e   : > { %1626 = dma.done.wait (%p1452_p12), %s1174_s4, 128  }
 0x94f   : > { %1628 = vsyncadd (%p1452_p12), %s1174_s4, 4294967168  ;;  %s25_s28 = sadd.s32 1, %s2097_s16   ;;  %s2100_s21 = sld [smem:[#allocation7_spill]] }
 0x950   : > { %p22_p13 = scmp.ge.s32.totalorder %s25_s28, 6   ;;  %s2101_s22 = sld [smem:[#allocation8_spill]] }
 0x951   : > { %s2102_s23 = sld [smem:[#allocation18_spill]] }
 0x952   : > { %s2103_s24 = sld [smem:[#allocation11_spill]]  ;;  %24 = sbr.rel (!%p22_p13) target bundleno = 10 (0xa), region = 140 }
 0x953   : > { %s2104_s25 = sld [smem:[#allocation12_spill]] }
 0x954   : > { %s2105_s26 = sld [smem:[#allocation14_spill]] }
 0x955   : > { %s2106_s27 = sld [smem:[#allocation16_spill]] }
 0x957   :  { %1180 = vsyncpa [#allocation4], 1 }
 0x958   :  { %1182 = vsyncpa [#allocation4 + $0x1], 1 }

</bundles_post_ra>
